<compile_context>
chip_gen: v6e
topology: v6e:2x2x1
jax: 0.10.0
libtpu: 0.0.40
codegen_flags: <defaults>
</compile_context>

<pallas_src>
import jax
import jax.numpy as jnp
from jax.experimental import pallas as pl
from jax.experimental.pallas import tpu as pltpu

_SELU_ALPHA = 1.6732632423543772
_SELU_SCALE = 1.0507009873554805


def _selu(x):
    # SELU; exp argument clamped to <= 0 so the unselected branch never overflows.
    return _SELU_SCALE * jnp.where(
        x > 0, x, _SELU_ALPHA * (jnp.exp(jnp.minimum(x, 0.0)) - 1.0))


def _luong_gate_kernel(ctx_ref, h_ref,
                       w1_ref, b1_ref, w2_ref, b2_ref,
                       w3h_ref, w3c_ref, b3_ref, w4_ref, b4_ref,
                       out_ref, wts_ref):
    ctx = ctx_ref[...]                                       # (TB, S, H)
    h = h_ref[...]                                           # (TB, H)

    # gamma_h = linear_in(h): Linear+SELU, Linear+SELU (Dropout = identity in eval).
    g = _selu(jnp.dot(h, w1_ref[...], preferred_element_type=jnp.float32) + b1_ref[...])
    g = _selu(jnp.dot(g, w2_ref[...], preferred_element_type=jnp.float32) + b2_ref[...])

    # scores[b, s] = sum_h ctx[b, s, h] * gamma_h[b, h]
    # (VPU multiply + lane reduction; avoids a pathological (S,H)@(H,1) N=1 MXU matmul
    #  per batch element.)
    scores = jnp.sum(ctx * g[:, None, :], axis=-1)           # (TB, S)

    # softmax over S (lane axis); denominator reciprocal on the EUP.
    m = jnp.max(scores, axis=-1, keepdims=True)
    e = jnp.exp(scores - m)
    inv = pl.reciprocal(jnp.sum(e, axis=-1, keepdims=True), approx=True)
    wts = e * inv                                            # (TB, S)

    # c_t[b, h] = sum_s wts[b, s] * ctx[b, s, h]   (sublane reduction, avoids M=1 matmuls)
    c_t = jnp.sum(wts[:, :, None] * ctx, axis=1)             # (TB, H)

    # output = linear_out(cat([h, c_t], 1)) done as row-block matmuls (no concat),
    # batched across the whole batch tile.
    o = _selu(jnp.dot(h, w3h_ref[...], preferred_element_type=jnp.float32)
              + jnp.dot(c_t, w3c_ref[...], preferred_element_type=jnp.float32)
              + b3_ref[...])
    o = _selu(jnp.dot(o, w4_ref[...], preferred_element_type=jnp.float32) + b4_ref[...])

    out_ref[...] = o.astype(out_ref.dtype)
    wts_ref[...] = wts.astype(wts_ref.dtype)                 # lane-dense (TB, S) store


def luong_gate_attention_forward(context, h, params, *, block_b=None):
    """context: (B, S, H) f32 — batch-first, i.e. self.context after init_context.
       h: (B, H) f32.  Returns (output (B, H), weights (B, S))."""
    B, S, H = context.shape
    w1, b1, w2, b2, w3, b3, w4, b4 = params

    # Pre-transpose nn.Linear weights to (in, out); split linear_out layer 1 into the
    # row-blocks that multiply h and c_t so the concat never materializes in-kernel.
    w1t, w2t, w4t = w1.T, w2.T, w4.T                         # (H, H)
    w3t = w3.T                                               # (2H, H)
    w3h, w3c = w3t[:H], w3t[H:]                              # (H, H) each

    if block_b is None:
        # Mem-bound on context reads: pick the biggest batch tile whose context slab
        # stays around ~4 MiB (double-buffered by the pipeline), sublane-aligned to 8.
        ctx_row_bytes = max(S * H * 4, 1)
        cap = max(8, (4 * 1024 * 1024) // ctx_row_bytes)
        block_b = min(B, max(8, (cap // 8) * 8))
    grid = (pl.cdiv(B, block_b),)

    def batched(shape):
        return pl.BlockSpec(shape, lambda i: (i,) + (0,) * (len(shape) - 1))

    def resident(shape):
        return pl.BlockSpec(shape, lambda i: (0,) * len(shape))

    out, wts = pl.pallas_call(
        _luong_gate_kernel,
        out_shape=(jax.ShapeDtypeStruct((B, H), jnp.float32),
                   jax.ShapeDtypeStruct((B, S), jnp.float32)),
        grid=grid,
        in_specs=[
            batched((block_b, S, H)),                        # context
            batched((block_b, H)),                           # h
            resident((H, H)), resident((1, H)),              # linear_in layer 1
            resident((H, H)), resident((1, H)),              # linear_in layer 2
            resident((H, H)), resident((H, H)), resident((1, H)),  # linear_out layer 1
            resident((H, H)), resident((1, H)),              # linear_out layer 2
        ],
        out_specs=(batched((block_b, H)), batched((block_b, S))),
        compiler_params=pltpu.CompilerParams(
            dimension_semantics=("parallel",),
            vmem_limit_bytes=64 * 1024 * 1024),
    )(context, h,
      w1t, b1[None, :], w2t, b2[None, :],
      w3h, w3c, b3[None, :], w4t, b4[None, :])
    return out, wts


def init_params(key, hidden_size):
    """Deterministic PyTorch-nn.Linear-style init (uniform +/- 1/sqrt(fan_in))."""
    def linear(k, in_f, out_f):
        k1, k2 = jax.random.split(k)
        bound = 1.0 / (in_f ** 0.5)
        w = jax.random.uniform(k1, (out_f, in_f), jnp.float32, -bound, bound)
        b = jax.random.uniform(k2, (out_f,), jnp.float32, -bound, bound)
        return w, b
    ks = jax.random.split(key, 4)
    w1, b1 = linear(ks[0], hidden_size, hidden_size)          # linear_in[0]
    w2, b2 = linear(ks[1], hidden_size, hidden_size)          # linear_in[3]
    w3, b3 = linear(ks[2], 2 * hidden_size, hidden_size)      # linear_out[0]
    w4, b4 = linear(ks[3], hidden_size, hidden_size)          # linear_out[3]
    return w1, b1, w2, b2, w3, b3, w4, b4


def reference(context, h, params):
    """Plain-JAX reference matching the PyTorch forward (selfatt=False, eval mode)."""
    w1, b1, w2, b2, w3, b3, w4, b4 = params
    hp = jax.lax.Precision.HIGHEST
    g = _selu(jnp.dot(h, w1.T, precision=hp) + b1)
    g = _selu(jnp.dot(g, w2.T, precision=hp) + b2)
    scores = jnp.einsum('bsh,bh->bs', context, g, precision=hp)
    w = jax.nn.softmax(scores, axis=-1)
    c_t = jnp.einsum('bs,bsh->bh', w, context, precision=hp)
    cat = jnp.concatenate([h, c_t], axis=1)
    o = _selu(jnp.dot(cat, w3.T, precision=hp) + b3)
    o = _selu(jnp.dot(o, w4.T, precision=hp) + b4)
    return o, w


if __name__ == "__main__":
    B, S, H, E = 2, 8, 32, 16      # E (emb_size) is unused by the selfatt=False forward
    key = jax.random.PRNGKey(0)
    k_ctx, k_h, k_p = jax.random.split(key, 3)
    # Encoder context arrives (S, B, H); init_context transposes it to batch-first.
    enc_context = jax.random.normal(k_ctx, (S, B, H), jnp.float32)
    context = jnp.transpose(enc_context, (1, 0, 2))          # (B, S, H) == self.context
    h = jax.random.normal(k_h, (B, H), jnp.float32)
    params = init_params(k_p, H)

    out, wts = luong_gate_attention_forward(context, h, params)
    out = jax.block_until_ready(out)
    wts = jax.block_until_ready(wts)

    out_ref, wts_ref = reference(context, h, params)
    assert out.shape == (B, H) and wts.shape == (B, S)
    assert jnp.allclose(out, out_ref, atol=1e-2, rtol=1e-2), "output mismatch"
    assert jnp.allclose(wts, wts_ref, atol=1e-2, rtol=1e-2), "weights mismatch"
    print("KERNEL_OK")
</pallas_src>

<mosaic_0001>
module attributes {stable_mosaic.version = 11 : i64} {
  func.func @_luong_gate_kernel(%arg0: i32, %arg1: memref<2x8x32xf32, #tpu.memory_space<vmem>>, %arg2: memref<2x32xf32, #tpu.memory_space<vmem>>, %arg3: memref<32x32xf32, #tpu.memory_space<vmem>>, %arg4: memref<1x32xf32, #tpu.memory_space<vmem>>, %arg5: memref<32x32xf32, #tpu.memory_space<vmem>>, %arg6: memref<1x32xf32, #tpu.memory_space<vmem>>, %arg7: memref<32x32xf32, #tpu.memory_space<vmem>>, %arg8: memref<32x32xf32, #tpu.memory_space<vmem>>, %arg9: memref<1x32xf32, #tpu.memory_space<vmem>>, %arg10: memref<32x32xf32, #tpu.memory_space<vmem>>, %arg11: memref<1x32xf32, #tpu.memory_space<vmem>>, %arg12: memref<2x32xf32, #tpu.memory_space<vmem>>, %arg13: memref<2x8xf32, #tpu.memory_space<vmem>>) attributes {dimension_semantics = [#tpu.dimension_semantics<parallel>], iteration_bounds = array<i64: 1>, scalar_prefetch = 0 : i64, scratch_operands = 0 : i64, tpu.core_type = #tpu.core_type<tc>, window_params = [{transform_indices = @transform_0, window_bounds = array<i64: 2, 8, 32>}, {transform_indices = @transform_1, window_bounds = array<i64: 2, 32>}, {pipeline_mode = #tpu.pipeline_mode<synchronous>, transform_indices = @transform_2, window_bounds = array<i64: 32, 32>}, {pipeline_mode = #tpu.pipeline_mode<synchronous>, transform_indices = @transform_3, window_bounds = array<i64: 1, 32>}, {pipeline_mode = #tpu.pipeline_mode<synchronous>, transform_indices = @transform_4, window_bounds = array<i64: 32, 32>}, {pipeline_mode = #tpu.pipeline_mode<synchronous>, transform_indices = @transform_5, window_bounds = array<i64: 1, 32>}, {pipeline_mode = #tpu.pipeline_mode<synchronous>, transform_indices = @transform_6, window_bounds = array<i64: 32, 32>}, {pipeline_mode = #tpu.pipeline_mode<synchronous>, transform_indices = @transform_7, window_bounds = array<i64: 32, 32>}, {pipeline_mode = #tpu.pipeline_mode<synchronous>, transform_indices = @transform_8, window_bounds = array<i64: 1, 32>}, {pipeline_mode = #tpu.pipeline_mode<synchronous>, transform_indices = @transform_9, window_bounds = array<i64: 32, 32>}, {pipeline_mode = #tpu.pipeline_mode<synchronous>, transform_indices = @transform_10, window_bounds = array<i64: 1, 32>}, {transform_indices = @transform_11, window_bounds = array<i64: 2, 32>}, {transform_indices = @transform_12, window_bounds = array<i64: 2, 8>}]} {
    %c0 = arith.constant 0 : index
    %c0_0 = arith.constant 0 : index
    %c0_1 = arith.constant 0 : index
    %0 = vector.load %arg1[%c0, %c0_0, %c0_1] : memref<2x8x32xf32, #tpu.memory_space<vmem>>, vector<2x8x32xf32>
    %c0_2 = arith.constant 0 : index
    %c0_3 = arith.constant 0 : index
    %1 = vector.load %arg2[%c0_2, %c0_3] : memref<2x32xf32, #tpu.memory_space<vmem>>, vector<2x32xf32>
    %c0_4 = arith.constant 0 : index
    %c0_5 = arith.constant 0 : index
    %2 = vector.load %arg3[%c0_4, %c0_5] : memref<32x32xf32, #tpu.memory_space<vmem>>, vector<32x32xf32>
    %cst = arith.constant dense<0.000000e+00> : vector<2x32xf32>
    %3 = tpu.matmul %1, %2, %cst {dimension_numbers = #tpu.dot_dimension_numbers<[1], [0], [0], [1], [0, 0, 1, 1], [], []>} : vector<2x32xf32>, vector<32x32xf32>, vector<2x32xf32> -> vector<2x32xf32>
    %c0_6 = arith.constant 0 : index
    %c0_7 = arith.constant 0 : index
    %4 = vector.load %arg4[%c0_6, %c0_7] : memref<1x32xf32, #tpu.memory_space<vmem>>, vector<1x32xf32>
    %5 = vector.broadcast %4 : vector<1x32xf32> to vector<2x32xf32>
    %6 = arith.addf %3, %5 : vector<2x32xf32>
    %cst_8 = arith.constant 0.000000e+00 : f32
    %7 = vector.broadcast %cst_8 : f32 to vector<2x32xf32>
    %8 = arith.cmpf ogt, %6, %7 : vector<2x32xf32>
    %cst_9 = arith.constant 0.000000e+00 : f32
    %9 = vector.broadcast %cst_9 : f32 to vector<2x32xf32>
    %10 = arith.minimumf %6, %9 : vector<2x32xf32>
    %11 = math.exp %10 : vector<2x32xf32>
    %cst_10 = arith.constant 1.000000e+00 : f32
    %12 = vector.broadcast %cst_10 : f32 to vector<2x32xf32>
    %13 = arith.subf %11, %12 : vector<2x32xf32>
    %cst_11 = arith.constant 1.67326319 : f32
    %14 = vector.broadcast %cst_11 : f32 to vector<2x32xf32>
    %15 = arith.mulf %14, %13 : vector<2x32xf32>
    %16 = arith.select %8, %6, %15 : vector<2x32xi1>, vector<2x32xf32>
    %cst_12 = arith.constant 1.05070102 : f32
    %17 = vector.broadcast %cst_12 : f32 to vector<2x32xf32>
    %18 = arith.mulf %17, %16 : vector<2x32xf32>
    %c0_13 = arith.constant 0 : index
    %c0_14 = arith.constant 0 : index
    %19 = vector.load %arg5[%c0_13, %c0_14] : memref<32x32xf32, #tpu.memory_space<vmem>>, vector<32x32xf32>
    %cst_15 = arith.constant dense<0.000000e+00> : vector<2x32xf32>
    %20 = tpu.matmul %18, %19, %cst_15 {dimension_numbers = #tpu.dot_dimension_numbers<[1], [0], [0], [1], [0, 0, 1, 1], [], []>} : vector<2x32xf32>, vector<32x32xf32>, vector<2x32xf32> -> vector<2x32xf32>
    %c0_16 = arith.constant 0 : index
    %c0_17 = arith.constant 0 : index
    %21 = vector.load %arg6[%c0_16, %c0_17] : memref<1x32xf32, #tpu.memory_space<vmem>>, vector<1x32xf32>
    %22 = vector.broadcast %21 : vector<1x32xf32> to vector<2x32xf32>
    %23 = arith.addf %20, %22 : vector<2x32xf32>
    %cst_18 = arith.constant 0.000000e+00 : f32
    %24 = vector.broadcast %cst_18 : f32 to vector<2x32xf32>
    %25 = arith.cmpf ogt, %23, %24 : vector<2x32xf32>
    %cst_19 = arith.constant 0.000000e+00 : f32
    %26 = vector.broadcast %cst_19 : f32 to vector<2x32xf32>
    %27 = arith.minimumf %23, %26 : vector<2x32xf32>
    %28 = math.exp %27 : vector<2x32xf32>
    %cst_20 = arith.constant 1.000000e+00 : f32
    %29 = vector.broadcast %cst_20 : f32 to vector<2x32xf32>
    %30 = arith.subf %28, %29 : vector<2x32xf32>
    %cst_21 = arith.constant 1.67326319 : f32
    %31 = vector.broadcast %cst_21 : f32 to vector<2x32xf32>
    %32 = arith.mulf %31, %30 : vector<2x32xf32>
    %33 = arith.select %25, %23, %32 : vector<2x32xi1>, vector<2x32xf32>
    %cst_22 = arith.constant 1.05070102 : f32
    %34 = vector.broadcast %cst_22 : f32 to vector<2x32xf32>
    %35 = arith.mulf %34, %33 : vector<2x32xf32>
    %36 = vector.shape_cast %35 : vector<2x32xf32> to vector<2x1x32xf32>
    %37 = vector.broadcast %36 : vector<2x1x32xf32> to vector<2x8x32xf32>
    %38 = arith.mulf %0, %37 : vector<2x8x32xf32>
    %cst_23 = arith.constant dense<0.000000e+00> : vector<2x8xf32>
    %39 = vector.multi_reduction <add>, %38, %cst_23 [2] : vector<2x8x32xf32> to vector<2x8xf32>
    %cst_24 = arith.constant dense<0xFF800000> : vector<2xf32>
    %40 = vector.multi_reduction <maximumf>, %39, %cst_24 [1] : vector<2x8xf32> to vector<2xf32>
    %41 = vector.shape_cast %40 : vector<2xf32> to vector<2x1xf32>
    %42 = vector.broadcast %41 : vector<2x1xf32> to vector<2x8xf32>
    %43 = arith.subf %39, %42 : vector<2x8xf32>
    %44 = math.exp %43 : vector<2x8xf32>
    %cst_25 = arith.constant dense<0.000000e+00> : vector<2xf32>
    %45 = vector.multi_reduction <add>, %44, %cst_25 [1] : vector<2x8xf32> to vector<2xf32>
    %46 = vector.shape_cast %45 : vector<2xf32> to vector<2x1xf32>
    %47 = tpu.reciprocal %46 {approx = true} : vector<2x1xf32> -> vector<2x1xf32>
    %48 = vector.broadcast %47 : vector<2x1xf32> to vector<2x8xf32>
    %49 = arith.mulf %44, %48 : vector<2x8xf32>
    %50 = vector.shape_cast %49 : vector<2x8xf32> to vector<2x8x1xf32>
    %51 = vector.broadcast %50 : vector<2x8x1xf32> to vector<2x8x32xf32>
    %52 = arith.mulf %51, %0 : vector<2x8x32xf32>
    %cst_26 = arith.constant dense<0.000000e+00> : vector<2x32xf32>
    %53 = vector.multi_reduction <add>, %52, %cst_26 [1] : vector<2x8x32xf32> to vector<2x32xf32>
    %c0_27 = arith.constant 0 : index
    %c0_28 = arith.constant 0 : index
    %54 = vector.load %arg7[%c0_27, %c0_28] : memref<32x32xf32, #tpu.memory_space<vmem>>, vector<32x32xf32>
    %cst_29 = arith.constant dense<0.000000e+00> : vector<2x32xf32>
    %55 = tpu.matmul %1, %54, %cst_29 {dimension_numbers = #tpu.dot_dimension_numbers<[1], [0], [0], [1], [0, 0, 1, 1], [], []>} : vector<2x32xf32>, vector<32x32xf32>, vector<2x32xf32> -> vector<2x32xf32>
    %c0_30 = arith.constant 0 : index
    %c0_31 = arith.constant 0 : index
    %56 = vector.load %arg8[%c0_30, %c0_31] : memref<32x32xf32, #tpu.memory_space<vmem>>, vector<32x32xf32>
    %cst_32 = arith.constant dense<0.000000e+00> : vector<2x32xf32>
    %57 = tpu.matmul %53, %56, %cst_32 {dimension_numbers = #tpu.dot_dimension_numbers<[1], [0], [0], [1], [0, 0, 1, 1], [], []>} : vector<2x32xf32>, vector<32x32xf32>, vector<2x32xf32> -> vector<2x32xf32>
    %58 = arith.addf %55, %57 : vector<2x32xf32>
    %c0_33 = arith.constant 0 : index
    %c0_34 = arith.constant 0 : index
    %59 = vector.load %arg9[%c0_33, %c0_34] : memref<1x32xf32, #tpu.memory_space<vmem>>, vector<1x32xf32>
    %60 = vector.broadcast %59 : vector<1x32xf32> to vector<2x32xf32>
    %61 = arith.addf %58, %60 : vector<2x32xf32>
    %cst_35 = arith.constant 0.000000e+00 : f32
    %62 = vector.broadcast %cst_35 : f32 to vector<2x32xf32>
    %63 = arith.cmpf ogt, %61, %62 : vector<2x32xf32>
    %cst_36 = arith.constant 0.000000e+00 : f32
    %64 = vector.broadcast %cst_36 : f32 to vector<2x32xf32>
    %65 = arith.minimumf %61, %64 : vector<2x32xf32>
    %66 = math.exp %65 : vector<2x32xf32>
    %cst_37 = arith.constant 1.000000e+00 : f32
    %67 = vector.broadcast %cst_37 : f32 to vector<2x32xf32>
    %68 = arith.subf %66, %67 : vector<2x32xf32>
    %cst_38 = arith.constant 1.67326319 : f32
    %69 = vector.broadcast %cst_38 : f32 to vector<2x32xf32>
    %70 = arith.mulf %69, %68 : vector<2x32xf32>
    %71 = arith.select %63, %61, %70 : vector<2x32xi1>, vector<2x32xf32>
    %cst_39 = arith.constant 1.05070102 : f32
    %72 = vector.broadcast %cst_39 : f32 to vector<2x32xf32>
    %73 = arith.mulf %72, %71 : vector<2x32xf32>
    %c0_40 = arith.constant 0 : index
    %c0_41 = arith.constant 0 : index
    %74 = vector.load %arg10[%c0_40, %c0_41] : memref<32x32xf32, #tpu.memory_space<vmem>>, vector<32x32xf32>
    %cst_42 = arith.constant dense<0.000000e+00> : vector<2x32xf32>
    %75 = tpu.matmul %73, %74, %cst_42 {dimension_numbers = #tpu.dot_dimension_numbers<[1], [0], [0], [1], [0, 0, 1, 1], [], []>} : vector<2x32xf32>, vector<32x32xf32>, vector<2x32xf32> -> vector<2x32xf32>
    %c0_43 = arith.constant 0 : index
    %c0_44 = arith.constant 0 : index
    %76 = vector.load %arg11[%c0_43, %c0_44] : memref<1x32xf32, #tpu.memory_space<vmem>>, vector<1x32xf32>
    %77 = vector.broadcast %76 : vector<1x32xf32> to vector<2x32xf32>
    %78 = arith.addf %75, %77 : vector<2x32xf32>
    %cst_45 = arith.constant 0.000000e+00 : f32
    %79 = vector.broadcast %cst_45 : f32 to vector<2x32xf32>
    %80 = arith.cmpf ogt, %78, %79 : vector<2x32xf32>
    %cst_46 = arith.constant 0.000000e+00 : f32
    %81 = vector.broadcast %cst_46 : f32 to vector<2x32xf32>
    %82 = arith.minimumf %78, %81 : vector<2x32xf32>
    %83 = math.exp %82 : vector<2x32xf32>
    %cst_47 = arith.constant 1.000000e+00 : f32
    %84 = vector.broadcast %cst_47 : f32 to vector<2x32xf32>
    %85 = arith.subf %83, %84 : vector<2x32xf32>
    %cst_48 = arith.constant 1.67326319 : f32
    %86 = vector.broadcast %cst_48 : f32 to vector<2x32xf32>
    %87 = arith.mulf %86, %85 : vector<2x32xf32>
    %88 = arith.select %80, %78, %87 : vector<2x32xi1>, vector<2x32xf32>
    %cst_49 = arith.constant 1.05070102 : f32
    %89 = vector.broadcast %cst_49 : f32 to vector<2x32xf32>
    %90 = arith.mulf %89, %88 : vector<2x32xf32>
    %c0_50 = arith.constant 0 : index
    %c0_51 = arith.constant 0 : index
    %91 = vector.load %arg12[%c0_50, %c0_51] : memref<2x32xf32, #tpu.memory_space<vmem>>, vector<2x32xf32>
    tpu.vector_store %arg12[%c0_50, %c0_51], %90 {strides = array<i32>} : memref<2x32xf32, #tpu.memory_space<vmem>>, vector<2x32xf32>,
    %c0_52 = arith.constant 0 : index
    %c0_53 = arith.constant 0 : index
    %92 = vector.load %arg13[%c0_52, %c0_53] : memref<2x8xf32, #tpu.memory_space<vmem>>, vector<2x8xf32>
    tpu.vector_store %arg13[%c0_52, %c0_53], %49 {strides = array<i32>} : memref<2x8xf32, #tpu.memory_space<vmem>>, vector<2x8xf32>,
    return
  }
  func.func @transform_0(%arg0: i32) -> (i32, i32, i32) {
    %c0_i32 = arith.constant 0 : i32
    %c0_i32_0 = arith.constant 0 : i32
    %c0_i32_1 = arith.constant 0 : i32
    return %arg0, %c0_i32, %c0_i32_0 : i32, i32, i32
  }
  func.func @transform_1(%arg0: i32) -> (i32, i32) {
    %c0_i32 = arith.constant 0 : i32
    %c0_i32_0 = arith.constant 0 : i32
    return %arg0, %c0_i32 : i32, i32
  }
  func.func @transform_2(%arg0: i32) -> (i32, i32) {
    %c0_i32 = arith.constant 0 : i32
    %c0_i32_0 = arith.constant 0 : i32
    %c0_i32_1 = arith.constant 0 : i32
    return %c0_i32, %c0_i32_0 : i32, i32
  }
  func.func @transform_3(%arg0: i32) -> (i32, i32) {
    %c0_i32 = arith.constant 0 : i32
    %c0_i32_0 = arith.constant 0 : i32
    %c0_i32_1 = arith.constant 0 : i32
    return %c0_i32, %c0_i32_0 : i32, i32
  }
  func.func @transform_4(%arg0: i32) -> (i32, i32) {
    %c0_i32 = arith.constant 0 : i32
    %c0_i32_0 = arith.constant 0 : i32
    %c0_i32_1 = arith.constant 0 : i32
    return %c0_i32, %c0_i32_0 : i32, i32
  }
  func.func @transform_5(%arg0: i32) -> (i32, i32) {
    %c0_i32 = arith.constant 0 : i32
    %c0_i32_0 = arith.constant 0 : i32
    %c0_i32_1 = arith.constant 0 : i32
    return %c0_i32, %c0_i32_0 : i32, i32
  }
  func.func @transform_6(%arg0: i32) -> (i32, i32) {
    %c0_i32 = arith.constant 0 : i32
    %c0_i32_0 = arith.constant 0 : i32
    %c0_i32_1 = arith.constant 0 : i32
    return %c0_i32, %c0_i32_0 : i32, i32
  }
  func.func @transform_7(%arg0: i32) -> (i32, i32) {
    %c0_i32 = arith.constant 0 : i32
    %c0_i32_0 = arith.constant 0 : i32
    %c0_i32_1 = arith.constant 0 : i32
    return %c0_i32, %c0_i32_0 : i32, i32
  }
  func.func @transform_8(%arg0: i32) -> (i32, i32) {
    %c0_i32 = arith.constant 0 : i32
    %c0_i32_0 = arith.constant 0 : i32
    %c0_i32_1 = arith.constant 0 : i32
    return %c0_i32, %c0_i32_0 : i32, i32
  }
  func.func @transform_9(%arg0: i32) -> (i32, i32) {
    %c0_i32 = arith.constant 0 : i32
    %c0_i32_0 = arith.constant 0 : i32
    %c0_i32_1 = arith.constant 0 : i32
    return %c0_i32, %c0_i32_0 : i32, i32
  }
  func.func @transform_10(%arg0: i32) -> (i32, i32) {
    %c0_i32 = arith.constant 0 : i32
    %c0_i32_0 = arith.constant 0 : i32
    %c0_i32_1 = arith.constant 0 : i32
    return %c0_i32, %c0_i32_0 : i32, i32
  }
  func.func @transform_11(%arg0: i32) -> (i32, i32) {
    %c0_i32 = arith.constant 0 : i32
    %c0_i32_0 = arith.constant 0 : i32
    return %arg0, %c0_i32 : i32, i32
  }
  func.func @transform_12(%arg0: i32) -> (i32, i32) {
    %c0_i32 = arith.constant 0 : i32
    %c0_i32_0 = arith.constant 0 : i32
    return %arg0, %c0_i32 : i32, i32
  }
}

</mosaic_0001>

<bundles_post_ra>
// kernel: tpu_custom_call.1
= control target key start
LH: loop header
LB: loop body
LE: loop exit
PB: predicated region body
PF: predicated region fallthrough
CT: control target
= control target key end

     0   :  { %18 = vsyncpa [#allocation3], 0  ;;  %s1292_s0 = inlined_call_operand.hbm [shape: f32[2,8,32], index: 0, kind: input, shape index: {}]   ;;  %s1293_s1 = inlined_call_operand.hbm [shape: f32[2,32], index: 1, kind: input, shape index: {}]   ;;  %s1294_s2 = inlined_call_operand.hbm [shape: f32[32,32], index: 2, kind: input, shape index: {}]   ;;  %s1295_s3 = inlined_call_operand.vmem [shape: f32[1,32], index: 3, kind: input, shape index: {}]   ;;  %s1296_s4 = inlined_call_operand.hbm [shape: f32[32,32], index: 4, kind: input, shape index: {}]   ;;  %s1297_s5 = inlined_call_operand.vmem [shape: f32[1,32], index: 5, kind: input, shape index: {}]   ;;  %s1298_s6 = inlined_call_operand.hbm [shape: f32[32,32], index: 6, kind: input, shape index: {}]   ;;  %s1299_s7 = inlined_call_operand.hbm [shape: f32[32,32], index: 7, kind: input, shape index: {}]   ;;  %s1300_s8 = inlined_call_operand.vmem [shape: f32[1,32], index: 8, kind: input, shape index: {}]   ;;  %s1301_s9 = inlined_call_operand.hbm [shape: f32[32,32], index: 9, kind: input, shape index: {}]   ;;  %s1302_s10 = inlined_call_operand.vmem [shape: f32[1,32], index: 10, kind: input, shape index: {}]   ;;  %s1303_s11 = inlined_call_operand.hbm [shape: f32[2,32], index: 11, kind: output, shape index: {0}]   ;;  %s1304_s12 = inlined_call_operand.hbm [shape: f32[2,8], index: 12, kind: output, shape index: {1}]  }
   0x1   :  { %19 = vsyncpa [#allocation6], 0 }
   0x2   :  { %20 = vsyncpa [#allocation9], 0 }
   0x3   :  { %21 = vsyncpa [#allocation12], 0 }
   0x4   :  { %22 = vsyncpa [#allocation4], 0 }
   0x5   :  { %23 = vsyncpa [#allocation16], 0  ;;  %s1083_s21 = smov [#allocation5]  }
   0x6   :  { %s42_s22 = sshll.u32 %s1083_s21, 4  ;;  %s43_s22 = int_to_ptr.vmem [resolvable:$true] %s42_s22 }
   0x7   :  { %s899_s23 = scalar_lea.vmem %s43_s22, 32  ;;  %p904_p1 = scmp.lt.s32.totalorder %s43_s22, %s43_s22 }
   0x8   :  { %p900_p0 = scmp.ne.s32.totalorder %s43_s22, %s899_s23  ;;  %p905_p2 = scmp.lt.s32.totalorder %s899_s23, %s899_s23 }
   0xa   :  { %p906_p3 = por %p905_p2, %p904_p1 }
   0xc   :  { %p907_p4 = pnand %p906_p3, %p900_p0 }
   0xe   :  { %910 = shalt.err (!%p907_p4)
}
   0xf   :  { %45 = dma.hbm_to_vmem [thread:$0]  %s1293_s1, 32, %s43_s22, [#allocation6]  }
  0x10   :  { %s1084_s26 = smov [#allocation8]   ;;  %s1085_s28 = smov [#allocation11]  }
  0x11   :  { %s65_s27 = sshll.u32 %s1084_s26, 4  ;;  %s91_s29 = sshll.u32 %s1085_s28, 4  ;;  %s66_s27 = int_to_ptr.vmem [resolvable:$true] %s65_s27  ;;  %s92_s29 = int_to_ptr.vmem [resolvable:$true] %s91_s29 }
  0x12   :  { %s919_s30 = scalar_lea.vmem %s66_s27, 512  ;;  %p924_p6 = scmp.lt.s32.totalorder %s66_s27, %s66_s27 }
  0x13   :  { %p920_p5 = scmp.ne.s32.totalorder %s66_s27, %s919_s30  ;;  %p925_p7 = scmp.lt.s32.totalorder %s919_s30, %s919_s30 }
  0x15   :  { %p926_p8 = por %p925_p7, %p924_p6 }
  0x17   :  { %p927_p9 = pnand %p926_p8, %p920_p5 }
  0x19   :  { %930 = shalt.err (!%p927_p9)
}
  0x1a   :  { %s1086_s13 = smov 128   ;;  %s1087_s14 = smov 8  }
  0x1b   :  { %71 = dma.hbm_to_vmem [thread:$0]  %s1296_s4, 512, %s66_s27, [#allocation9], %s1086_s13, %s1086_s13, %s1087_s14  }
  0x1c   :  { %s939_s1 = scalar_lea.vmem %s92_s29, 512  ;;  %p944_p11 = scmp.lt.s32.totalorder %s92_s29, %s92_s29 }
  0x1d   :  { %p940_p10 = scmp.ne.s32.totalorder %s92_s29, %s939_s1  ;;  %p945_p12 = scmp.lt.s32.totalorder %s939_s1, %s939_s1 }
  0x1f   :  { %p946_p13 = por %p945_p12, %p944_p11 }
  0x21   :  { %p947_p0 = pnand %p946_p13, %p940_p10 }
  0x23   :  { %950 = shalt.err (!%p947_p0)
}
  0x24   :  { %97 = dma.hbm_to_vmem [thread:$0]  %s1299_s7, 512, %s92_s29, [#allocation12], %s1086_s13, %s1086_s13, %s1087_s14  }
  0x25   :  { %s1088_s19 = smov [#allocation2]   ;;  %s1089_s21 = smov [#allocation7]  }
  0x26   :  { %s29_s20 = sshll.u32 %s1088_s19, 4  ;;  %s51_s4 = sshll.u32 %s1089_s21, 4  ;;  %s30_s20 = int_to_ptr.vmem [resolvable:$true] %s29_s20  ;;  %s52_s4 = int_to_ptr.vmem [resolvable:$true] %s51_s4 }
  0x27   :  { %s959_s22 = scalar_lea.vmem %s30_s20, 256  ;;  %p964_p2 = scmp.lt.s32.totalorder %s30_s20, %s30_s20 }
  0x28   :  { %p960_p1 = scmp.ne.s32.totalorder %s30_s20, %s959_s22  ;;  %p965_p3 = scmp.lt.s32.totalorder %s959_s22, %s959_s22 }
  0x2a   :  { %p966_p4 = por %p965_p3, %p964_p2 }
  0x2c   :  { %p967_p5 = pnand %p966_p4, %p960_p1 }
  0x2e   :  { %970 = shalt.err (!%p967_p5)
}
  0x2f   :  { %35 = dma.hbm_to_vmem [thread:$0]  %s1292_s0, 256, %s30_s20, [#allocation3], %s1086_s13, %s1086_s13, %s1087_s14  }
  0x30   :  { %s979_s7 = scalar_lea.vmem %s52_s4, 512  ;;  %p984_p7 = scmp.lt.s32.totalorder %s52_s4, %s52_s4 }
  0x31   :  { %p980_p6 = scmp.ne.s32.totalorder %s52_s4, %s979_s7  ;;  %p985_p8 = scmp.lt.s32.totalorder %s979_s7, %s979_s7 }
  0x33   :  { %p986_p9 = por %p985_p8, %p984_p7 }
  0x35   :  { %p987_p10 = pnand %p986_p9, %p980_p6 }
  0x37   :  { %990 = shalt.err (!%p987_p10)
}
  0x38   :  { %57 = dma.hbm_to_vmem [thread:$0]  %s1294_s2, 512, %s52_s4, [#allocation6], %s1086_s13, %s1086_s13, %s1087_s14  }
  0x39   :  { %s1090_s27 = smov [#allocation10]   ;;  %s1091_s29 = smov [#allocation13]  }
  0x3a   :  { %s79_s28 = sshll.u32 %s1090_s27, 4  ;;  %s105_s0 = sshll.u32 %s1091_s29, 4  ;;  %s80_s28 = int_to_ptr.vmem [resolvable:$true] %s79_s28  ;;  %s106_s0 = int_to_ptr.vmem [resolvable:$true] %s105_s0 }
  0x3b   :  { %s999_s30 = scalar_lea.vmem %s80_s28, 512  ;;  %p1004_p12 = scmp.lt.s32.totalorder %s80_s28, %s80_s28 }
  0x3c   :  { %p1000_p11 = scmp.ne.s32.totalorder %s80_s28, %s999_s30  ;;  %p1005_p13 = scmp.lt.s32.totalorder %s999_s30, %s999_s30 }
  0x3e   :  { %p1006_p0 = por %p1005_p13, %p1004_p12 }
  0x40   :  { %p1007_p1 = pnand %p1006_p0, %p1000_p11 }
  0x42   :  { %1010 = shalt.err (!%p1007_p1)
}
  0x43   :  { %85 = dma.hbm_to_vmem [thread:$0]  %s1298_s6, 512, %s80_s28, [#allocation9], %s1086_s13, %s1086_s13, %s1087_s14  }
  0x44   :  { %s1019_s2 = scalar_lea.vmem %s106_s0, 512  ;;  %p1024_p3 = scmp.lt.s32.totalorder %s106_s0, %s106_s0 }
  0x45   :  { %p1020_p2 = scmp.ne.s32.totalorder %s106_s0, %s1019_s2  ;;  %p1025_p4 = scmp.lt.s32.totalorder %s1019_s2, %s1019_s2 }
  0x47   :  { %p1026_p5 = por %p1025_p4, %p1024_p3 }
  0x49   :  { %p1027_p6 = pnand %p1026_p5, %p1020_p2 }
  0x4b   :  { %1030 = shalt.err (!%p1027_p6)
}
  0x4c   :  { %111 = dma.hbm_to_vmem [thread:$0]  %s1301_s9, 512, %s106_s0, [#allocation12], %s1086_s13, %s1086_s13, %s1087_s14  }
  0x4d   :  { %1071 = dma.done.wait [#allocation3], 256  }
  0x4e   :  { %1072 = vsyncadd [#allocation3], 4294967040 }
  0x4f   :  { %1073 = dma.done.wait [#allocation6], 544  }
  0x50   :  { %1074 = vsyncadd [#allocation6], 4294966752 }
  0x51   :  { %1075 = dma.done.wait [#allocation9], 1024  }
  0x52   :  { %1076 = vsyncadd [#allocation9], 4294966272 }
  0x53   :  { %1077 = dma.done.wait [#allocation12], 1024  }
  0x54   :  { %1078 = vsyncadd [#allocation12], 4294966272  ;;  %v1092_v0 = vmov 0.0   ;;  %vm1093_vm0 = vmmov 0   ;;  %v141_v1 = vld [vmem:[#allocation7 + $0x18] sm:$0xff]  ;;  %v140_v2 = vld [vmem:[#allocation7 + $0x10] sm:$0xff]  ;;  %v327_v29 = vlaneseq }
  0x55   :  { %805 = vmatprep.subr.mxu0 %v1092_v0  ;;  %813 = vmatprep.mubr.msk.f32.mxu0 %vm1093_vm0, %v1092_v0  ;;  %v139_v3 = vld [vmem:[#allocation7 + $0x8] sm:$0xff]  ;;  %v138_v4 = vld [vmem:[#allocation7] sm:$0xff]  ;;  %v1210_v5 = vld [vmem:[#allocation5] sm:$0x3]  ;;  %vm149_vm1 = vcmask 261120   ;;  %vm376_vm4 = vcmask 1041409  }
  0x56   :  { %816 = vmatprep.subr.mxu1 %v1092_v0  ;;  %824 = vmatprep.mubr.msk.f32.mxu1 %vm1093_vm0, %v1092_v0  ;;  %v234_v6 = vld [vmem:[#allocation8 + $0x18] sm:$0xff]  ;;  %v233_v7 = vld [vmem:[#allocation8 + $0x10] sm:$0xff]  ;;  %v232_v8 = vld [vmem:[#allocation8 + $0x8] sm:$0xff]  ;;  %v1094_v27 = vmov 1966171168   ;;  %v1231_v32 = vshrl.u32 %v327_v29, 7 }
  0x57   :  { %806 = vmatpush3.msra.mxu0 %v141_v1  ;;  %817 = vmatpush3.msra.mxu1 %v234_v6  ;;  %v231_v9 = vld [vmem:[#allocation8] sm:$0xff]  ;;  %v767_v10 = vld [vmem:[%s1295_s3] ss:$0 sm:$0xff]  ;;  %v325_v28 = vunpack.c.l.s4 %v1094_v27  ;;  %v1237_v45 = vld [vmem:[#allocation2 + $0x8] sm:$0xff]  ;;  %v367_v51 = vand.u32 127, %v327_v29  ;;  %vm379_vm5 = vcmask 58368  }
  0x58   :  { %807 = vmatprep.subr.mxu0 %v1092_v0  ;;  %818 = vmatprep.subr.mxu1 %v1092_v0  ;;  %v770_v21 = vld [vmem:[%s1297_s5] ss:$0 sm:$0xff]  ;;  %v348_v39 = vsub.s32 0, %v1231_v32  ;;  %v1095_v59 = vmov 0   ;;  %v390_v60 = vsub.s32 1, %v1231_v32  ;;  %v465_v27 = vld [vmem:[#allocation11] sm:$0xff] }
  0x59   :  { %808 = vmatpush3.msra.mxu0 %v140_v2  ;;  %819 = vmatpush3.msra.mxu1 %v233_v7  ;;  %v326_v31 = vunpack.c.0.s8 %v325_v28  ;;  %v1235_v42 = vld [vmem:[#allocation2] sm:$0xff]  ;;  %v1244_v53 = vsub.s32 %v367_v51, %v1231_v32  ;;  %v633_v51 = vld [vmem:[#allocation13 + $0x18] sm:$0xff]  ;;  %s1096_s18 = smov [#allocation15]  }
  0x5a   :  { %809 = vmatprep.subr.mxu0 %v1092_v0  ;;  %820 = vmatprep.subr.mxu1 %v1092_v0  ;;  %s751_s19 = sshll.u32 %s1096_s18, 4  ;;  %s752_s19 = int_to_ptr.vmem [resolvable:$true] %s751_s19 }
  0x5b   :  { %810 = vmatpush3.msra.mxu0 %v139_v3  ;;  %821 = vmatpush3.msra.mxu1 %v232_v8  ;;  %v329_v35 = vsub.s32 %v326_v31, %v1231_v32  ;;  %s1031_s20 = scalar_lea.vmem %s752_s19, 32  ;;  %p1036_p8 = scmp.lt.s32.totalorder %s752_s19, %s752_s19 }
  0x5c   :  { %811 = vmatprep.subr.mxu0 %v1092_v0  ;;  %822 = vmatprep.subr.mxu1 %v1092_v0  ;;  %p1032_p7 = scmp.ne.s32.totalorder %s752_s19, %s1031_s20  ;;  %p1037_p9 = scmp.lt.s32.totalorder %s1031_s20, %s1031_s20 }
  0x5d   :  { %812 = vmatpush3.msra.mxu0 %v138_v4  ;;  %823 = vmatpush3.msra.mxu1 %v231_v9 }
  0x5e   :  { %814 = vmatmul.mubr.msk.f32.vlgmr.msra.gmra.mxu0 %vm149_vm1, %v1210_v5  ;;  %827 = vmatprep.subr.mxu0 %v1092_v0  ;;  %p1038_p10 = por %p1037_p9, %p1036_p8 }
  0x5f   :  { %835 = vmatprep.mubr.msk.f32.mxu0 %vm1093_vm0, %v1092_v0  ;;  %838 = vmatprep.subr.mxu1 %v1092_v0 }
  0x60   :  { %876 = vset.pattern.permute.xlu0 %v1095_v59  ;;  %875 = vset.pattern.permute.xlu1 %v1095_v59  ;;  %p1039_p11 = pnand %p1038_p10, %p1032_p7 }
 0x11e   :  { %v219_v11 = vpop.f32.mrf.mxu0 }
 0x11f   :  { %v220_v12 = vadd.f32 %v767_v10, %v219_v11 }
 0x120   :  { %v815_v13 = vpop.f32.mrf.mxu0 }
 0x121   :  { %v224_v14 = vmin.f32 %v220_v12, 0.0  ;;  %vm223_vm2 = vcmp.gt.f32.partialorder %v220_v12, 0.0 }
 0x123   :  { %v225_v15 = vmul.f32 1.442695, %v224_v14 }
 0x125   :  { %877 = vpow2.f32 %v225_v15 }
 0x132   :  { %v878_v16 = vpop.eup %877 }
 0x133   :  { %v769_v17 = vadd.f32 -1.0, %v878_v16 }
 0x135   :  { %v228_v18 = vmul.f32 1.6732632, %v769_v17 }
 0x137   :  { %v229_v19 = vsel %vm223_vm2, %v220_v12, %v228_v18 }
 0x138   :  { %v230_v20 = vmul.f32 1.050701, %v229_v19 }
 0x13a   :  { %825 = vmatmul.mubr.msk.f32.vlgmr.msra.gmra.mxu1 %vm149_vm1, %v230_v20  ;;  %v464_v20 = vld [vmem:[#allocation10 + $0x18] sm:$0xff] }
 0x13b   :  { %846 = vmatprep.mubr.msk.f32.mxu1 %vm1093_vm0, %v1092_v0  ;;  %839 = vmatpush3.msra.mxu1 %v464_v20 }
 0x13c   :  { %840 = vmatprep.subr.mxu1 %v1092_v0 }
 0x1fa   :  { %v311_v22 = vpop.f32.mrf.mxu1 }
 0x1fb   :  { %v312_v23 = vadd.f32 %v770_v21, %v311_v22  ;;  %v468_v21 = vld [vmem:[#allocation11 + $0x18] sm:$0xff]  ;;  %v463_v22 = vld [vmem:[#allocation10 + $0x10] sm:$0xff] }
 0x1fc   :  { %v826_v24 = vpop.f32.mrf.mxu1  ;;  %828 = vmatpush3.msra.mxu0 %v468_v21  ;;  %841 = vmatpush3.msra.mxu1 %v463_v22 }
 0x1fd   :  { %v316_v25 = vmin.f32 %v312_v23, 0.0  ;;  %vm315_vm3 = vcmp.gt.f32.partialorder %v312_v23, 0.0  ;;  %829 = vmatprep.subr.mxu0 %v1092_v0  ;;  %842 = vmatprep.subr.mxu1 %v1092_v0  ;;  %v462_v24 = vld [vmem:[#allocation10 + $0x8] sm:$0xff] }
 0x1fe   :  { %843 = vmatpush3.msra.mxu1 %v462_v24 }
 0x1ff   :  { %v317_v26 = vmul.f32 1.442695, %v316_v25  ;;  %844 = vmatprep.subr.mxu1 %v1092_v0  ;;  %v466_v25 = vld [vmem:[#allocation11 + $0x8] sm:$0xff] }
 0x201   :  { %879 = vpow2.f32 %v317_v26  ;;  %v461_v26 = vld [vmem:[#allocation10] sm:$0xff] }
 0x202   :  { %845 = vmatpush3.msra.mxu1 %v461_v26 }
 0x203   :  { %847 = vmatmul.mubr.msk.f32.vlgmr.msra.gmra.mxu1 %vm149_vm1, %v1210_v5 }
 0x20e   :  { %v880_v30 = vpop.eup %879 }
 0x20f   :  { %v772_v33 = vadd.f32 -1.0, %v880_v30 }
 0x211   :  { %v320_v34 = vmul.f32 1.6732632, %v772_v33 }
 0x213   :  { %v321_v36 = vsel %vm315_vm3, %v312_v23, %v320_v34  ;;  %v467_v23 = vld [vmem:[#allocation11 + $0x10] sm:$0xff] }
 0x214   :  { %v322_v37 = vmul.f32 1.050701, %v321_v36  ;;  %830 = vmatpush3.msra.mxu0 %v467_v23 }
 0x215   :  { %831 = vmatprep.subr.mxu0 %v1092_v0 }
 0x216   :  { %v330_v38 = vrot.slane %v322_v37, %v329_v35  ;;  %832 = vmatpush3.msra.mxu0 %v466_v25 }
 0x217   :  { %833 = vmatprep.subr.mxu0 %v1092_v0 }
 0x218   :  { %v338_v40 = vrot.slane %v330_v38, %v329_v35  ;;  %v331_v41 = vcombine.high %v330_v38, %v330_v38  ;;  %834 = vmatpush3.msra.mxu0 %v465_v27 }
 0x219   :  { %849 = vmatprep.subr.mxu0 %v1092_v0 }
 0x21a   :  { %v349_v43 = vrot.slane %v338_v40, %v348_v39  ;;  %v345_v44 = vrot.slane %v331_v41, %v329_v35 }
 0x21c   :  { %v356_v46 = vmul.f32 %v349_v43, %v1235_v42  ;;  %v353_v47 = vrot.slane %v345_v44, %v348_v39 }
 0x21e   :  { %v358_v48 = vsel %vm149_vm1, %v356_v46, 0.0  ;;  %v357_v49 = vmul.f32 %v353_v47, %v1237_v45 }
 0x21f   :  { %359 = vadd.xlane.f32.xlu0 %v358_v48 }
 0x220   :  { %v361_v50 = vsel %vm149_vm1, %v357_v49, 0.0 }
 0x223   :  { %362 = vadd.xlane.f32.xlu0 %v361_v50 }
 0x2a8   :  { %v360_v52 = vpop.xlane.xlu0 %359 }
 0x2a9   :  { %v371_v55 = vrot.slane %v360_v52, %v1244_v53 }
 0x2ac   :  { %v363_v54 = vpop.xlane.xlu0 %362 }
 0x2ad   :  { %v375_v56 = vrot.slane %v363_v54, %v1244_v53 }
 0x2af   :  { %v377_v57 = vsel %vm376_vm4, %v375_v56, %v371_v55  ;;  %v775_v56 = vld [vmem:[%s1300_s8] ss:$0 sm:$0xff] }
 0x2b0   :  { %v380_v58 = vsel %vm379_vm5, %v377_v57, -inf }
 0x2b1   :  { %381 = vmax.xlane.f32.xlu1 %v380_v58 }
 0x2c3   :  { %v610_v49 = vpop.f32.mrf.mxu1 }
 0x2c5   :  { %v848_v50 = vpop.f32.mrf.mxu1 }
 0x33a   :  { %v382_v61 = vpop.xlane.xlu1 %381 }
 0x33b   :  { %v387_v62 = vrot.slane %v382_v61, %v348_v39  ;;  %v391_v63 = vrot.slane %v382_v61, %v390_v60 }
 0x33d   :  { %v394_v1 = vsub.f32 %v360_v52, %v387_v62  ;;  %v395_v2 = vsub.f32 %v363_v54, %v391_v63  ;;  %v632_v52 = vld [vmem:[#allocation13 + $0x10] sm:$0xff]  ;;  %v630_v54 = vld [vmem:[#allocation13] sm:$0xff] }
 0x33f   :  { %v396_v3 = vmul.f32 1.442695, %v394_v1  ;;  %v398_v4 = vmul.f32 1.442695, %v395_v2 }
 0x341   :  { %881 = vpow2.f32 %v396_v3 }
 0x342   :  { %883 = vpow2.f32 %v398_v4 }
 0x34e   :  { %v882_v6 = vpop.eup %881 }
 0x34f   :  { %v884_v7 = vpop.eup %883  ;;  %403 = vperm.xlu1 %875, %v882_v6  }
 0x350   :  { %406 = vperm.xlu0 %876, %v884_v7  }
 0x3ca   :  { %v404_v8 = vpop.permute.xlu1 %403 }
 0x3cb   :  { %v407_v9 = vpop.permute.xlu0 %406  ;;  %v411_v10 = vrot.slane %v404_v8, %v1244_v53 }
 0x3cc   :  { %v415_v11 = vrot.slane %v407_v9, %v1244_v53 }
 0x3ce   :  { %v416_v12 = vsel %vm376_vm4, %v415_v11, %v411_v10 }
 0x3cf   :  { %v418_v13 = vsel %vm379_vm5, %v416_v12, 0.0 }
 0x3d0   :  { %419 = vadd.xlane.f32.xlu1 %v418_v13 }
 0x459   :  { %v420_v14 = vpop.xlane.xlu1 %419 }
 0x45a   :  { %885 = vrcp.f32 %v420_v14 }
 0x467   :  { %v886_v15 = vpop.eup %885 }
 0x468   :  { %v426_v16 = vrot.slane %v886_v15, %v348_v39  ;;  %v430_v18 = vrot.slane %v886_v15, %v390_v60 }
 0x46a   :  { %v433_v17 = vmul.f32 %v882_v6, %v426_v16  ;;  %v434_v19 = vmul.f32 %v884_v7, %v430_v18 }
 0x46c   :  { %437 = vperm.xlu0 %876, %v433_v17  }
 0x470   :  { %442 = vperm.xlu0 %876, %v434_v19  }
 0x4e7   :  { %v438_v28 = vpop.permute.xlu0 %437 }
 0x4e8   :  { %v445_v29 = vmul.f32 %v438_v28, %v1235_v42  ;;  %v727_v33 = vrot.slane %v438_v28, %v1244_v53 }
 0x4ea   :  { %v447_v30 = vsel %vm149_vm1, %v445_v29, 0.0 }
 0x4eb   :  { %v448_v31 = vrot.slane %v447_v30, 4  ;;  %v443_v32 = vpop.permute.xlu0 %442 }
 0x4ec   :  { %v446_v34 = vmul.f32 %v443_v32, %v1237_v45  ;;  %v731_v35 = vrot.slane %v443_v32, %v1244_v53  ;;  %v631_v53 = vld [vmem:[#allocation13 + $0x8] sm:$0xff] }
 0x4ed   :  { %v449_v36 = vadd.f32 %v448_v31, %v447_v30 }
 0x4ee   :  { %v454_v37 = vsel %vm149_vm1, %v446_v34, 0.0  ;;  %v732_v5 = vsel %vm376_vm4, %v731_v35, %v727_v33 }
 0x4ef   :  { %v450_v38 = vrot.slane %v449_v36, 2  ;;  %v455_v39 = vrot.slane %v454_v37, 4  ;;  %734 = vst.msk [vmem:[#allocation15] sm:$0x3] %vm379_vm5, %v732_v5 }
 0x4f1   :  { %v451_v40 = vadd.f32 %v450_v38, %v449_v36  ;;  %v456_v41 = vadd.f32 %v455_v39, %v454_v37 }
 0x4f3   :  { %v457_v42 = vrot.slane %v456_v41, 2  ;;  %v452_v43 = vrot.slane %v451_v40, 1 }
 0x4f5   :  { %v458_v44 = vadd.f32 %v457_v42, %v456_v41  ;;  %v453_v47 = vadd.f32 %v452_v43, %v451_v40 }
 0x4f7   :  { %v459_v46 = vrot.slane %v458_v44, 1 }
 0x4f9   :  { %v460_v48 = vadd.f32 %v459_v46, %v458_v44 }
 0x4fb   :  { %v471_v45 = vsel %vm376_vm4, %v460_v48, %v453_v47 }
 0x4fc   :  { %836 = vmatmul.mubr.msk.f32.vlgmr.msra.gmra.mxu0 %vm149_vm1, %v471_v45 }
 0x4fd   :  { %857 = vmatprep.mubr.msk.f32.mxu0 %vm1093_vm0, %v1092_v0  ;;  %850 = vmatpush3.msra.mxu0 %v633_v51 }
 0x4fe   :  { %851 = vmatprep.subr.mxu0 %v1092_v0 }
 0x4ff   :  { %852 = vmatpush3.msra.mxu0 %v632_v52 }
 0x500   :  { %853 = vmatprep.subr.mxu0 %v1092_v0 }
 0x501   :  { %854 = vmatpush3.msra.mxu0 %v631_v53 }
 0x502   :  { %855 = vmatprep.subr.mxu0 %v1092_v0 }
 0x503   :  { %856 = vmatpush3.msra.mxu0 %v630_v54 }
 0x5bc   :  { %v540_v55 = vpop.f32.mrf.mxu0 }
 0x5bd   :  { %v611_v57 = vadd.f32 %v610_v49, %v540_v55 }
 0x5be   :  { %v837_v58 = vpop.f32.mrf.mxu0 }
 0x5bf   :  { %v621_v59 = vadd.f32 %v775_v56, %v611_v57 }
 0x5c1   :  { %v623_v60 = vmin.f32 %v621_v59, 0.0  ;;  %vm622_vm6 = vcmp.gt.f32.partialorder %v621_v59, 0.0 }
 0x5c3   :  { %v624_v61 = vmul.f32 1.442695, %v623_v60 }
 0x5c5   :  { %887 = vpow2.f32 %v624_v61 }
 0x5d2   :  { %v888_v62 = vpop.eup %887 }
 0x5d3   :  { %v776_v63 = vadd.f32 -1.0, %v888_v62 }
 0x5d5   :  { %v627_v1 = vmul.f32 1.6732632, %v776_v63 }
 0x5d7   :  { %v628_v2 = vsel %vm622_vm6, %v621_v59, %v627_v1 }
 0x5d8   :  { %v629_v3 = vmul.f32 1.050701, %v628_v2 }
 0x5da   :  { %858 = vmatmul.mubr.msk.f32.vlgmr.msra.gmra.mxu0 %vm149_vm1, %v629_v3 }
 0x5db   :  { %1042 = shalt.err (!%p1039_p11)
}
 0x5dc   :  { %754 = dma.vmem_to_hbm [thread:$0]  %s752_s19, 32, %s1304_s12, [#allocation16]   ;;  %v777_v0 = vld [vmem:[%s1302_s10] ss:$0 sm:$0xff]  ;;  %vm722_vm8 = vcmask 254976  }
 0x5dd   :  { %s1097_s23 = smov [#allocation14]  }
 0x5de   :  { %s741_s24 = sshll.u32 %s1097_s23, 4  ;;  %s742_s24 = int_to_ptr.vmem [resolvable:$true] %s741_s24 }
 0x5df   :  { %s1051_s12 = scalar_lea.vmem %s742_s24, 32  ;;  %p1056_p13 = scmp.lt.s32.totalorder %s742_s24, %s742_s24 }
 0x5e0   :  { %p1052_p12 = scmp.ne.s32.totalorder %s742_s24, %s1051_s12  ;;  %p1057_p0 = scmp.lt.s32.totalorder %s1051_s12, %s1051_s12 }
 0x5e2   :  { %p1058_p1 = por %p1057_p0, %p1056_p13 }
 0x5e4   :  { %p1059_p2 = pnand %p1058_p1, %p1052_p12 }
 0x69a   :  { %v710_v4 = vpop.f32.mrf.mxu0 }
 0x69b   :  { %v711_v6 = vadd.f32 %v777_v0, %v710_v4 }
 0x69c   :  { %v859_v7 = vpop.f32.mrf.mxu0 }
 0x69d   :  { %v715_v8 = vmin.f32 %v711_v6, 0.0  ;;  %vm714_vm7 = vcmp.gt.f32.partialorder %v711_v6, 0.0 }
 0x69f   :  { %v716_v9 = vmul.f32 1.442695, %v715_v8 }
 0x6a1   :  { %889 = vpow2.f32 %v716_v9 }
 0x6ae   :  { %v890_v10 = vpop.eup %889 }
 0x6af   :  { %v779_v11 = vadd.f32 -1.0, %v890_v10 }
 0x6b1   :  { %v719_v12 = vmul.f32 1.6732632, %v779_v11 }
 0x6b3   :  { %v720_v13 = vsel %vm714_vm7, %v711_v6, %v719_v12 }
 0x6b4   :  { %v721_v14 = vmul.f32 1.050701, %v720_v13 }
 0x6b6   :  { %723 = vst.msk [vmem:[#allocation14] sm:$0x3] %vm722_vm8, %v721_v14 }
 0x6b7   :  { %1062 = shalt.err (!%p1059_p2)
}
 0x6b8   :  { %744 = dma.vmem_to_hbm [thread:$0]  %s742_s24, 32, %s1303_s11, [#allocation4]  }
 0x6b9   :  { %1079 = dma.done.wait [#allocation4], 32  }
 0x6ba   :  { %1080 = vsyncadd [#allocation4], 4294967264 }
 0x6bb   :  { %1081 = dma.done.wait [#allocation16], 32  }
 0x6bc   :  { %1082 = vsyncadd [#allocation16], 4294967264 }
 0x6bd   :  { %761 = vsyncpa [#allocation3], 1 }
 0x6be   :  { %762 = vsyncpa [#allocation6], 1 }
 0x6bf   :  { %763 = vsyncpa [#allocation9], 1 }
 0x6c0   :  { %764 = vsyncpa [#allocation12], 1 }
 0x6c1   :  { %765 = vsyncpa [#allocation4], 1 }
 0x6c2   :  { %766 = vsyncpa [#allocation16], 1 }

</bundles_post_ra>
